<compile_context>
chip_gen: v7x
topology: tpu7x:2x2x1
jax: 0.10.0
libtpu: 0.0.40
codegen_flags: <defaults>
</compile_context>

<pallas_src>
import functools

import numpy as np
import jax
import jax.numpy as jnp
from jax.experimental import pallas as pl
from jax.experimental.pallas import tpu as pltpu


def _round_up(x: int, m: int) -> int:
    return ((x + m - 1) // m) * m


def doc_encoder_kernel(emb_ref, wrep_ref, sseg_ref, sl_ref, rrep_ref, out_ref, *, inv_len):
    # emb_ref : (TB, L*D) bf16   flattened embeddings for TB examples
    # wrep_ref: (D, L*D)  f32    W_b^T tiled L times along columns
    # sseg_ref: (L*D, D)  f32    0/1 selector: column d sums positions l*D+d over l
    # sl_ref  : (L*D, L)  f32    0/1 selector: column l sums positions l*D+d over d
    # rrep_ref: (L, L*D)  f32    0/1 selector: repeats a length-L row D times per entry
    # out_ref : (TB, D)   f32
    emb16 = emb_ref[...]                       # bf16, lives in the input VMEM buffer
    sseg = sseg_ref[...]                       # f32 0/1

    # hidden = mean over the L token positions (bf16 x bf16 MXU matmul, f32 accumulate).
    hidden = jnp.dot(emb16, sseg.astype(jnp.bfloat16),
                     preferred_element_type=jnp.float32) * inv_len          # (TB, D) f32

    # vt[b, l*D+d] = (W_b @ hidden_b)[d]  (v tiled L times along lanes, single small matmul)
    vt = jnp.dot(hidden, wrep_ref[...], preferred_element_type=jnp.float32)  # (TB, L*D) f32

    # scores[b, l] = emb[b, l, :] . (W_b @ hidden_b)  via a segment-sum matmul.
    # Re-read/upcast the bf16 tile per consumer so no full f32 copy stays live.
    prod = emb_ref[...].astype(jnp.float32) * vt                             # (TB, L*D) f32
    scores = jnp.dot(prod, sl_ref[...], preferred_element_type=jnp.float32)  # (TB, L)   f32

    # Exact softmax over the L positions.
    m = jnp.max(scores, axis=-1, keepdims=True)
    p = jnp.exp(scores - m)
    a = p / jnp.sum(p, axis=-1, keepdims=True)                               # (TB, L)   f32

    # ct[b, d] = sum_l a[b, l] * emb[b, l, d]
    arep = jnp.dot(a, rrep_ref[...], preferred_element_type=jnp.float32)     # (TB, L*D) f32
    ct = jnp.dot(emb_ref[...].astype(jnp.float32) * arep, sseg,
                 preferred_element_type=jnp.float32)                         # (TB, D)   f32
    out_ref[...] = ct.astype(out_ref.dtype)


@functools.partial(jax.jit, static_argnames=("block_b",))
def document_encoder(encodes, emb_table, w_b, *, block_b=None):
    """encodes: [B, L] int32 token ids (pad = -1), emb_table: [V+1, D] f32, w_b: [D, D] f32.

    Returns doc_out: [B, D] f32.
    """
    B, L = encodes.shape
    D = emb_table.shape[1]

    # Batch tile: multiple of 8 (sublane-dense), large enough to amortize per-step
    # pipeline overhead, and >= 2 grid steps when possible so the parallel batch axis
    # can be sharded across both v7x TensorCores.
    b8 = _round_up(B, 8)
    if block_b is None:
        block_b = min(1024, b8)
        if b8 >= 16 and block_b == b8:
            block_b = _round_up(b8 // 2, 8)
    assert block_b % 8 == 0, "block_b must be a multiple of 8"
    B_pad = _round_up(B, block_b)

    # Single XLA pass produces the flat bf16 activation:
    # pad the tiny id tensor (not the activation), cast the tiny table (not the
    # activation), then gather + free row-major reshape.
    # TODO(synk): fuse this gather fully into the kernel (scalar-prefetch ids + in-kernel
    # table lookup) once Mosaic's dynamic row-gather is robust for arbitrary vocab sizes;
    # that would drop the remaining [B, L*D] HBM write+read pair.
    ids = jnp.pad(encodes + 1, ((0, B_pad - B), (0, 0)))             # [B_pad, L] int32
    emb_flat = emb_table.astype(jnp.bfloat16)[ids].reshape(B_pad, L * D)

    # Tiny constant operands (resident across all grid steps).
    wt_rep = jnp.tile(w_b.astype(jnp.float32).T, (1, L))             # (D, L*D)
    sseg = jnp.tile(jnp.eye(D, dtype=jnp.float32), (L, 1))           # (L*D, D)
    sl = jnp.repeat(jnp.eye(L, dtype=jnp.float32), D, axis=0)        # (L*D, L)
    rrep = sl.T                                                      # (L, L*D)

    grid = (B_pad // block_b,)
    kernel = functools.partial(doc_encoder_kernel, inv_len=1.0 / L)
    out = pl.pallas_call(
        kernel,
        out_shape=jax.ShapeDtypeStruct((B_pad, D), jnp.float32),
        grid_spec=pltpu.PrefetchScalarGridSpec(
            num_scalar_prefetch=0,
            grid=grid,
            in_specs=[
                pl.BlockSpec((block_b, L * D), lambda b: (b, 0)),
                pl.BlockSpec((D, L * D), lambda b: (0, 0)),
                pl.BlockSpec((L * D, D), lambda b: (0, 0)),
                pl.BlockSpec((L * D, L), lambda b: (0, 0)),
                pl.BlockSpec((L, L * D), lambda b: (0, 0)),
            ],
            # Block spans the full output width -> contiguous HBM writeback per step.
            out_specs=pl.BlockSpec((block_b, D), lambda b: (b, 0)),
        ),
        compiler_params=pltpu.CompilerParams(
            # Batch-tile axis is embarrassingly parallel -> shards across v7x's 2 TCs.
            dimension_semantics=("parallel",),
            # >= v5e's 16 MiB default scope, == v7x default, far below physical VMEM.
            vmem_limit_bytes=32 * 1024 * 1024,
        ),
    )(emb_flat, wt_rep, sseg, sl, rrep)
    return out[:B]


if __name__ == "__main__":
    key = jax.random.PRNGKey(0)
    vocab_size = 50
    embedding_dim = 32
    max_len = 8
    batch = 2

    k_emb, k_w, k_tok0, k_tok1 = jax.random.split(key, 4)

    # Parameters (deterministic, synthetic):
    # token embedding table (indices are token_id + 1, so vocab_size + 1 rows)
    emb_table = jax.random.normal(k_emb, (vocab_size + 1, embedding_dim), jnp.float32)
    # W_b: xavier_uniform_ on (D, D)  ->  U(-sqrt(6/(D+D)), +sqrt(6/(D+D)))
    bound = float(np.sqrt(6.0 / (embedding_dim + embedding_dim)))
    W_b = jax.random.uniform(k_w, (embedding_dim, embedding_dim), jnp.float32,
                             minval=-bound, maxval=bound)

    # Synthetic variable-length "docstrings" (lists of token ids), as the module expects.
    x = [
        np.asarray(jax.random.randint(k_tok0, (5,), 0, vocab_size)).tolist(),   # shorter than max_len
        np.asarray(jax.random.randint(k_tok1, (11,), 0, vocab_size)).tolist(),  # longer than max_len
    ]

    # Pad / truncate exactly like the reference forward (pad value -1).
    seq = []
    for docstring in x:
        if len(docstring) > max_len:
            seq.append(docstring[:max_len])
        else:
            seq.append(docstring + [-1] * (max_len - len(docstring)))
    encodes = jnp.asarray(seq, dtype=jnp.int32)                # [B, max_len]

    doc_out = document_encoder(encodes, emb_table, W_b)        # [B, D]
    doc_out = jax.block_until_ready(doc_out)

    # Pure-JAX reference: f32 math on the same bf16-rounded embeddings the kernel reads.
    emb_f32 = emb_table.astype(jnp.bfloat16).astype(jnp.float32)[encodes + 1]  # [B, L, D]
    hidden0 = jnp.mean(emb_f32, axis=1)                                        # [B, D]
    scores = jnp.einsum('bld,de,be->bl', emb_f32, W_b, hidden0)                # [B, L]
    attn = jax.nn.softmax(scores, axis=1)                                      # [B, L]
    ref = jnp.einsum('bl,bld->bd', attn, emb_f32)                              # [B, D]

    assert doc_out.shape == (batch, embedding_dim)
    assert jnp.allclose(doc_out, ref, atol=2e-3, rtol=2e-3), "Pallas kernel mismatch vs reference"

    print("KERNEL_OK")
</pallas_src>

<mosaic_0001>
module attributes {stable_mosaic.version = 11 : i64} {
  func.func @doc_encoder_kernel(%arg0: i32, %arg1: memref<8x256xbf16, #tpu.memory_space<vmem>>, %arg2: memref<32x256xf32, #tpu.memory_space<vmem>>, %arg3: memref<256x32xf32, #tpu.memory_space<vmem>>, %arg4: memref<256x8xf32, #tpu.memory_space<vmem>>, %arg5: memref<8x256xf32, #tpu.memory_space<vmem>>, %arg6: memref<8x32xf32, #tpu.memory_space<vmem>>) attributes {dimension_semantics = [#tpu.dimension_semantics<parallel>], iteration_bounds = array<i64: 1>, scalar_prefetch = 0 : i64, scratch_operands = 0 : i64, tpu.core_type = #tpu.core_type<tc>, window_params = [{transform_indices = @transform_0, window_bounds = array<i64: 8, 256>}, {pipeline_mode = #tpu.pipeline_mode<synchronous>, transform_indices = @transform_1, window_bounds = array<i64: 32, 256>}, {pipeline_mode = #tpu.pipeline_mode<synchronous>, transform_indices = @transform_2, window_bounds = array<i64: 256, 32>}, {pipeline_mode = #tpu.pipeline_mode<synchronous>, transform_indices = @transform_3, window_bounds = array<i64: 256, 8>}, {pipeline_mode = #tpu.pipeline_mode<synchronous>, transform_indices = @transform_4, window_bounds = array<i64: 8, 256>}, {transform_indices = @transform_5, window_bounds = array<i64: 8, 32>}]} {
    %c0 = arith.constant 0 : index
    %c0_0 = arith.constant 0 : index
    %0 = vector.load %arg1[%c0, %c0_0] : memref<8x256xbf16, #tpu.memory_space<vmem>>, vector<8x256xbf16>
    %c0_1 = arith.constant 0 : index
    %c0_2 = arith.constant 0 : index
    %1 = vector.load %arg3[%c0_1, %c0_2] : memref<256x32xf32, #tpu.memory_space<vmem>>, vector<256x32xf32>
    %2 = arith.truncf %1 : vector<256x32xf32> to vector<256x32xbf16>
    %cst = arith.constant dense<0.000000e+00> : vector<8x32xf32>
    %3 = tpu.matmul %0, %2, %cst {dimension_numbers = #tpu.dot_dimension_numbers<[1], [0], [0], [1], [0, 0, 1, 1], [], []>} : vector<8x256xbf16>, vector<256x32xbf16>, vector<8x32xf32> -> vector<8x32xf32>
    %cst_3 = arith.constant 1.250000e-01 : f32
    %4 = vector.broadcast %cst_3 : f32 to vector<8x32xf32>
    %5 = arith.mulf %3, %4 : vector<8x32xf32>
    %c0_4 = arith.constant 0 : index
    %c0_5 = arith.constant 0 : index
    %6 = vector.load %arg2[%c0_4, %c0_5] : memref<32x256xf32, #tpu.memory_space<vmem>>, vector<32x256xf32>
    %cst_6 = arith.constant dense<0.000000e+00> : vector<8x256xf32>
    %7 = tpu.matmul %5, %6, %cst_6 {dimension_numbers = #tpu.dot_dimension_numbers<[1], [0], [0], [1], [0, 0, 1, 1], [], []>} : vector<8x32xf32>, vector<32x256xf32>, vector<8x256xf32> -> vector<8x256xf32>
    %c0_7 = arith.constant 0 : index
    %c0_8 = arith.constant 0 : index
    %8 = vector.load %arg1[%c0_7, %c0_8] : memref<8x256xbf16, #tpu.memory_space<vmem>>, vector<8x256xbf16>
    %9 = arith.extf %8 : vector<8x256xbf16> to vector<8x256xf32>
    %10 = arith.mulf %9, %7 : vector<8x256xf32>
    %c0_9 = arith.constant 0 : index
    %c0_10 = arith.constant 0 : index
    %11 = vector.load %arg4[%c0_9, %c0_10] : memref<256x8xf32, #tpu.memory_space<vmem>>, vector<256x8xf32>
    %cst_11 = arith.constant dense<0.000000e+00> : vector<8x8xf32>
    %12 = tpu.matmul %10, %11, %cst_11 {dimension_numbers = #tpu.dot_dimension_numbers<[1], [0], [0], [1], [0, 0, 1, 1], [], []>} : vector<8x256xf32>, vector<256x8xf32>, vector<8x8xf32> -> vector<8x8xf32>
    %cst_12 = arith.constant dense<0xFF800000> : vector<8xf32>
    %13 = vector.multi_reduction <maximumf>, %12, %cst_12 [1] : vector<8x8xf32> to vector<8xf32>
    %14 = vector.shape_cast %13 : vector<8xf32> to vector<8x1xf32>
    %15 = vector.broadcast %14 : vector<8x1xf32> to vector<8x8xf32>
    %16 = arith.subf %12, %15 : vector<8x8xf32>
    %17 = math.exp %16 : vector<8x8xf32>
    %cst_13 = arith.constant dense<0.000000e+00> : vector<8xf32>
    %18 = vector.multi_reduction <add>, %17, %cst_13 [1] : vector<8x8xf32> to vector<8xf32>
    %19 = vector.shape_cast %18 : vector<8xf32> to vector<8x1xf32>
    %20 = vector.broadcast %19 : vector<8x1xf32> to vector<8x8xf32>
    %21 = arith.divf %17, %20 : vector<8x8xf32>
    %c0_14 = arith.constant 0 : index
    %c0_15 = arith.constant 0 : index
    %22 = vector.load %arg5[%c0_14, %c0_15] : memref<8x256xf32, #tpu.memory_space<vmem>>, vector<8x256xf32>
    %cst_16 = arith.constant dense<0.000000e+00> : vector<8x256xf32>
    %23 = tpu.matmul %21, %22, %cst_16 {dimension_numbers = #tpu.dot_dimension_numbers<[1], [0], [0], [1], [0, 0, 1, 1], [], []>} : vector<8x8xf32>, vector<8x256xf32>, vector<8x256xf32> -> vector<8x256xf32>
    %c0_17 = arith.constant 0 : index
    %c0_18 = arith.constant 0 : index
    %24 = vector.load %arg1[%c0_17, %c0_18] : memref<8x256xbf16, #tpu.memory_space<vmem>>, vector<8x256xbf16>
    %25 = arith.extf %24 : vector<8x256xbf16> to vector<8x256xf32>
    %26 = arith.mulf %25, %23 : vector<8x256xf32>
    %cst_19 = arith.constant dense<0.000000e+00> : vector<8x32xf32>
    %27 = tpu.matmul %26, %1, %cst_19 {dimension_numbers = #tpu.dot_dimension_numbers<[1], [0], [0], [1], [0, 0, 1, 1], [], []>} : vector<8x256xf32>, vector<256x32xf32>, vector<8x32xf32> -> vector<8x32xf32>
    %c0_20 = arith.constant 0 : index
    %c0_21 = arith.constant 0 : index
    %28 = vector.load %arg6[%c0_20, %c0_21] : memref<8x32xf32, #tpu.memory_space<vmem>>, vector<8x32xf32>
    tpu.vector_store %arg6[%c0_20, %c0_21], %27 {strides = array<i32>} : memref<8x32xf32, #tpu.memory_space<vmem>>, vector<8x32xf32>,
    return
  }
  func.func @transform_0(%arg0: i32) -> (i32, i32) {
    %c0_i32 = arith.constant 0 : i32
    %c0_i32_0 = arith.constant 0 : i32
    return %arg0, %c0_i32 : i32, i32
  }
  func.func @transform_1(%arg0: i32) -> (i32, i32) {
    %c0_i32 = arith.constant 0 : i32
    %c0_i32_0 = arith.constant 0 : i32
    %c0_i32_1 = arith.constant 0 : i32
    return %c0_i32, %c0_i32_0 : i32, i32
  }
  func.func @transform_2(%arg0: i32) -> (i32, i32) {
    %c0_i32 = arith.constant 0 : i32
    %c0_i32_0 = arith.constant 0 : i32
    %c0_i32_1 = arith.constant 0 : i32
    return %c0_i32, %c0_i32_0 : i32, i32
  }
  func.func @transform_3(%arg0: i32) -> (i32, i32) {
    %c0_i32 = arith.constant 0 : i32
    %c0_i32_0 = arith.constant 0 : i32
    %c0_i32_1 = arith.constant 0 : i32
    return %c0_i32, %c0_i32_0 : i32, i32
  }
  func.func @transform_4(%arg0: i32) -> (i32, i32) {
    %c0_i32 = arith.constant 0 : i32
    %c0_i32_0 = arith.constant 0 : i32
    %c0_i32_1 = arith.constant 0 : i32
    return %c0_i32, %c0_i32_0 : i32, i32
  }
  func.func @transform_5(%arg0: i32) -> (i32, i32) {
    %c0_i32 = arith.constant 0 : i32
    %c0_i32_0 = arith.constant 0 : i32
    return %arg0, %c0_i32 : i32, i32
  }
}

</mosaic_0001>

<bundles_post_ra>
// kernel: tile.14
= control target key start
LH: loop header
LB: loop body
LE: loop exit
PB: predicated region body
PF: predicated region fallthrough
CT: control target
= control target key end

     0   :  { %vm92_vm0 = vcmask 1047556   ;;  %s459_s14 = smov 96   ;;  %s460_s26 = smov 64   ;;  %vm3_vm1 = vcmask 261120   ;;  %vm96_vm2 = vcmask 1048320   ;;  %vm183_vm3 = vcmask 785920   ;;  %s904_s0 = inlined_call_operand.vmem [shape: f32[32,8,32], index: 0, kind: input, shape index: {}]   ;;  %s905_s1 = inlined_call_operand.vmem [shape: f32[32,256], index: 1, kind: output, shape index: {}]  }
   0x1   :  { %v392_v0 = vld [vmem:[%s904_s0 + $0x7] ss:$8 sm:$0xf]   ;;  %v387_v3 = vld [vmem:[%s904_s0 + $0x3] ss:$8 sm:$0xf]  }
   0x2   :  { %v393_v1 = vld [vmem:[%s904_s0 + $0x7] ss:$8 sm:$0xf0]   ;;  %v388_v4 = vld [vmem:[%s904_s0 + $0x3] ss:$8 sm:$0xf0]  }
   0x3   :  { %v114_v2 = vsel %vm92_vm0, %v393_v1, %v392_v0  ;;  %v93_v5 = vsel %vm92_vm0, %v388_v4, %v387_v3  ;;  %v395_v6 = vld [vmem:[%s904_s0 + $0x87] ss:$8 sm:$0xf]   ;;  %v389_v9 = vld [vmem:[%s904_s0 + $0x83] ss:$8 sm:$0xf]  }
   0x4   :  { %115 = vrot.lane.b32.xlu1 %v114_v2, %s459_s14  ;;  %v396_v7 = vld [vmem:[%s904_s0 + $0x87] ss:$8 sm:$0xf0]   ;;  %94 = vrot.lane.b32.xlu0 %v93_v5, %s459_s14  ;;  %v390_v10 = vld [vmem:[%s904_s0 + $0x83] ss:$8 sm:$0xf0]  }
   0x5   :  { %v125_v8 = vsel %vm92_vm0, %v396_v7, %v395_v6  ;;  %v103_v11 = vsel %vm92_vm0, %v390_v10, %v389_v9  ;;  %v401_v12 = vld [vmem:[%s904_s0 + $0xc3] ss:$8 sm:$0xf]   ;;  %v407_v18 = vld [vmem:[%s904_s0 + $0xc7] ss:$8 sm:$0xf]  }
   0x6   :  { %v402_v13 = vld [vmem:[%s904_s0 + $0xc3] ss:$8 sm:$0xf0]   ;;  %v408_v19 = vld [vmem:[%s904_s0 + $0xc7] ss:$8 sm:$0xf0]  }
   0x7   :  { %v398_v14 = vld [vmem:[%s904_s0 + $0x43] ss:$8 sm:$0xf]   ;;  %v147_v16 = vsel %vm92_vm0, %v402_v13, %v401_v12  ;;  %v404_v20 = vld [vmem:[%s904_s0 + $0x47] ss:$8 sm:$0xf]   ;;  %v169_v22 = vsel %vm92_vm0, %v408_v19, %v407_v18 }
   0x8   :  { %v399_v15 = vld [vmem:[%s904_s0 + $0x43] ss:$8 sm:$0xf0]   ;;  %126 = vrot.lane.b32.xlu1 %v125_v8, %s459_s14  ;;  %104 = vrot.lane.b32.xlu0 %v103_v11, %s459_s14  ;;  %v405_v21 = vld [vmem:[%s904_s0 + $0x47] ss:$8 sm:$0xf0]  }
   0x9   :  { %v136_v17 = vsel %vm92_vm0, %v399_v15, %v398_v14  ;;  %v158_v23 = vsel %vm92_vm0, %v405_v21, %v404_v20  ;;  %v412_v24 = vld [vmem:[%s904_s0 + $0x82] ss:$8 sm:$0xf]   ;;  %v418_v30 = vld [vmem:[%s904_s0 + $0x86] ss:$8 sm:$0xf]  }
   0xa   :  { %v413_v25 = vld [vmem:[%s904_s0 + $0x82] ss:$8 sm:$0xf0]   ;;  %v419_v31 = vld [vmem:[%s904_s0 + $0x86] ss:$8 sm:$0xf0]  }
   0xb   :  { %v410_v26 = vld [vmem:[%s904_s0 + $0x2] ss:$8 sm:$0xf]   ;;  %v190_v28 = vsel %vm92_vm0, %v413_v25, %v412_v24  ;;  %v415_v32 = vld [vmem:[%s904_s0 + $0x6] ss:$8 sm:$0xf]   ;;  %v212_v34 = vsel %vm92_vm0, %v419_v31, %v418_v30 }
   0xc   :  { %148 = vrot.lane.b32.xlu1 %v147_v16, %s459_s14  ;;  %137 = vrot.lane.b32.xlu0 %v136_v17, %s459_s14  ;;  %v411_v27 = vld [vmem:[%s904_s0 + $0x2] ss:$8 sm:$0xf0]   ;;  %v416_v33 = vld [vmem:[%s904_s0 + $0x6] ss:$8 sm:$0xf0]  }
   0xd   :  { %v180_v29 = vsel %vm92_vm0, %v411_v27, %v410_v26  ;;  %v201_v35 = vsel %vm92_vm0, %v416_v33, %v415_v32  ;;  %v424_v36 = vld [vmem:[%s904_s0 + $0xc2] ss:$8 sm:$0xf]   ;;  %v430_v40 = vld [vmem:[%s904_s0 + $0xc6] ss:$8 sm:$0xf]  }
   0xe   :  { %v425_v37 = vld [vmem:[%s904_s0 + $0xc2] ss:$8 sm:$0xf0]   ;;  %v431_v42 = vld [vmem:[%s904_s0 + $0xc6] ss:$8 sm:$0xf0]  }
   0xf   :  { %v421_v38 = vld [vmem:[%s904_s0 + $0x42] ss:$8 sm:$0xf]   ;;  %v234_v41 = vsel %vm92_vm0, %v425_v37, %v424_v36  ;;  %v427_v43 = vld [vmem:[%s904_s0 + $0x46] ss:$8 sm:$0xf]   ;;  %v256_v53 = vsel %vm92_vm0, %v431_v42, %v430_v40 }
  0x10   :  { %170 = vrot.lane.b32.xlu1 %v169_v22, %s459_s14  ;;  %159 = vrot.lane.b32.xlu0 %v158_v23, %s459_s14  ;;  %v422_v39 = vld [vmem:[%s904_s0 + $0x42] ss:$8 sm:$0xf0]   ;;  %v428_v45 = vld [vmem:[%s904_s0 + $0x46] ss:$8 sm:$0xf0]  }
  0x11   :  { %v223_v44 = vsel %vm92_vm0, %v422_v39, %v421_v38  ;;  %v367_v46 = vld [vmem:[%s904_s0 + $0x80] ss:$4 sm:$0xff]   ;;  %v245_v55 = vsel %vm92_vm0, %v428_v45, %v427_v43  ;;  %v435_v56 = vld [vmem:[%s904_s0 + $0x81] ss:$8 sm:$0xf]   ;;  %s461_s25 = smov 32  }
  0x12   :  { %368 = vst.msk [vmem:[%s905_s1 + $0x20] ss:$8 sm:$0x3] %vm3_vm1, %v367_v46   ;;  %369 = vst.msk [vmem:[%s905_s1 + $0x11] ss:$8 sm:$0xc] %vm3_vm1, %v367_v46  }
  0x13   :  { %370 = vst.msk [vmem:[%s905_s1 + $0x2] ss:$8 sm:$0x30] %vm3_vm1, %v367_v46   ;;  %371 = vst.msk [vmem:[%s905_s1 - $0xd] ss:$8 sm:$0xc0] %vm3_vm1, %v367_v46  }
  0x14   :  { %191 = vrot.lane.b32.xlu1 %v190_v28, %s460_s26  ;;  %181 = vrot.lane.b32.xlu0 %v180_v29, %s460_s26  ;;  %v372_v47 = vld [vmem:[%s904_s0 + $0xa0] ss:$4 sm:$0xff]   ;;  %v436_v57 = vld [vmem:[%s904_s0 + $0x81] ss:$8 sm:$0xf0]   ;;  %vm270_vm4 = vcmask 523520  }
  0x15   :  { %v2_v48 = vld [vmem:[%s904_s0] ss:$4 sm:$0xff]   ;;  %373 = vst.msk [vmem:[%s905_s1 + $0x24] ss:$8 sm:$0x3] %vm3_vm1, %v372_v47   ;;  %v277_v60 = vsel %vm92_vm0, %v436_v57, %v435_v56 }
  0x16   :  { %v352_v49 = vld [vmem:[%s904_s0 + $0x20] ss:$4 sm:$0xff]   ;;  %374 = vst.msk [vmem:[%s905_s1 + $0x15] ss:$8 sm:$0xc] %vm3_vm1, %v372_v47  }
  0x17   :  { %375 = vst.msk [vmem:[%s905_s1 + $0x6] ss:$8 sm:$0x30] %vm3_vm1, %v372_v47   ;;  %376 = vst.msk [vmem:[%s905_s1 - $0x9] ss:$8 sm:$0xc0] %vm3_vm1, %v372_v47  }
  0x18   :  { %213 = vrot.lane.b32.xlu1 %v212_v34, %s460_s26  ;;  %202 = vrot.lane.b32.xlu0 %v201_v35, %s460_s26  ;;  %4 = vst.msk [vmem:[%s905_s1] ss:$8 sm:$0x3] %vm3_vm1, %v2_v48   ;;  %349 = vst.msk [vmem:[%s905_s1 - $0xf] ss:$8 sm:$0xc] %vm3_vm1, %v2_v48  }
  0x19   :  { %350 = vst.msk [vmem:[%s905_s1 - $0x1e] ss:$8 sm:$0x30] %vm3_vm1, %v2_v48   ;;  %351 = vst.msk [vmem:[%s905_s1 - $0x2d] ss:$8 sm:$0xc0] %vm3_vm1, %v2_v48  }
  0x1a   :  { %353 = vst.msk [vmem:[%s905_s1 + $0x4] ss:$8 sm:$0x3] %vm3_vm1, %v352_v49   ;;  %354 = vst.msk [vmem:[%s905_s1 - $0xb] ss:$8 sm:$0xc] %vm3_vm1, %v352_v49  }
  0x1b   :  { %355 = vst.msk [vmem:[%s905_s1 - $0x1a] ss:$8 sm:$0x30] %vm3_vm1, %v352_v49   ;;  %356 = vst.msk [vmem:[%s905_s1 - $0x29] ss:$8 sm:$0xc0] %vm3_vm1, %v352_v49  }
  0x1c   :  { %235 = vrot.lane.b32.xlu1 %v234_v41, %s460_s26  ;;  %v377_v50 = vld [vmem:[%s904_s0 + $0xc0] ss:$4 sm:$0xff]   ;;  %224 = vrot.lane.b32.xlu0 %v223_v44, %s460_s26  ;;  %v433_v58 = vld [vmem:[%s904_s0 + $0x1] ss:$8 sm:$0xf]  }
  0x1d   :  { %v382_v51 = vld [vmem:[%s904_s0 + $0xe0] ss:$4 sm:$0xff]   ;;  %378 = vst.msk [vmem:[%s905_s1 + $0x30] ss:$8 sm:$0x3] %vm3_vm1, %v377_v50  }
  0x1e   :  { %v357_v52 = vld [vmem:[%s904_s0 + $0x40] ss:$4 sm:$0xff]   ;;  %379 = vst.msk [vmem:[%s905_s1 + $0x21] ss:$8 sm:$0xc] %vm3_vm1, %v377_v50  }
  0x1f   :  { %380 = vst.msk [vmem:[%s905_s1 + $0x12] ss:$8 sm:$0x30] %vm3_vm1, %v377_v50   ;;  %381 = vst.msk [vmem:[%s905_s1 + $0x3] ss:$8 sm:$0xc0] %vm3_vm1, %v377_v50  }
  0x20   :  { %383 = vst.msk [vmem:[%s905_s1 + $0x34] ss:$8 sm:$0x3] %vm3_vm1, %v382_v51   ;;  %384 = vst.msk [vmem:[%s905_s1 + $0x25] ss:$8 sm:$0xc] %vm3_vm1, %v382_v51   ;;  %257 = vrot.lane.b32.xlu1 %v256_v53, %s460_s26  ;;  %246 = vrot.lane.b32.xlu0 %v245_v55, %s460_s26 }
  0x21   :  { %385 = vst.msk [vmem:[%s905_s1 + $0x16] ss:$8 sm:$0x30] %vm3_vm1, %v382_v51   ;;  %386 = vst.msk [vmem:[%s905_s1 + $0x7] ss:$8 sm:$0xc0] %vm3_vm1, %v382_v51  }
  0x22   :  { %358 = vst.msk [vmem:[%s905_s1 + $0x10] ss:$8 sm:$0x3] %vm3_vm1, %v357_v52   ;;  %359 = vst.msk [vmem:[%s905_s1 + $0x1] ss:$8 sm:$0xc] %vm3_vm1, %v357_v52  }
  0x23   :  { %360 = vst.msk [vmem:[%s905_s1 - $0xe] ss:$8 sm:$0x30] %vm3_vm1, %v357_v52   ;;  %361 = vst.msk [vmem:[%s905_s1 - $0x1d] ss:$8 sm:$0xc0] %vm3_vm1, %v357_v52  }
  0x24   :  { %v362_v54 = vld [vmem:[%s904_s0 + $0x60] ss:$4 sm:$0xff]   ;;  %v434_v59 = vld [vmem:[%s904_s0 + $0x1] ss:$8 sm:$0xf0]   ;;  %278 = vrot.lane.b32.xlu1 %v277_v60, %s461_s25 }
  0x25   :  { %363 = vst.msk [vmem:[%s905_s1 + $0x14] ss:$8 sm:$0x3] %vm3_vm1, %v362_v54   ;;  %364 = vst.msk [vmem:[%s905_s1 + $0x5] ss:$8 sm:$0xc] %vm3_vm1, %v362_v54   ;;  %v267_v61 = vsel %vm92_vm0, %v434_v59, %v433_v58 }
  0x26   :  { %365 = vst.msk [vmem:[%s905_s1 - $0xa] ss:$8 sm:$0x30] %vm3_vm1, %v362_v54   ;;  %366 = vst.msk [vmem:[%s905_s1 - $0x19] ss:$8 sm:$0xc0] %vm3_vm1, %v362_v54   ;;  %268 = vrot.lane.b32.xlu0 %v267_v61, %s461_s25 }
  0x27   :  { %v441_v62 = vld [vmem:[%s904_s0 + $0x85] ss:$8 sm:$0xf]   ;;  %v447_v4 = vld [vmem:[%s904_s0 + $0xc1] ss:$8 sm:$0xf]  }
  0x28   :  { %v442_v63 = vld [vmem:[%s904_s0 + $0x85] ss:$8 sm:$0xf0]   ;;  %v448_v5 = vld [vmem:[%s904_s0 + $0xc1] ss:$8 sm:$0xf0]  }
  0x29   :  { %v438_v0 = vld [vmem:[%s904_s0 + $0x5] ss:$8 sm:$0xf]   ;;  %v299_v2 = vsel %vm92_vm0, %v442_v63, %v441_v62  ;;  %v444_v6 = vld [vmem:[%s904_s0 + $0x41] ss:$8 sm:$0xf]   ;;  %v321_v8 = vsel %vm92_vm0, %v448_v5, %v447_v4 }
  0x2a   :  { %v439_v1 = vld [vmem:[%s904_s0 + $0x5] ss:$8 sm:$0xf0]   ;;  %v445_v7 = vld [vmem:[%s904_s0 + $0x41] ss:$8 sm:$0xf0]   ;;  %300 = vrot.lane.b32.xlu1 %v299_v2, %s461_s25 }
  0x2b   :  { %v288_v3 = vsel %vm92_vm0, %v439_v1, %v438_v0  ;;  %v310_v9 = vsel %vm92_vm0, %v445_v7, %v444_v6  ;;  %v453_v10 = vld [vmem:[%s904_s0 + $0xc5] ss:$8 sm:$0xf]  }
  0x2c   :  { %289 = vrot.lane.b32.xlu0 %v288_v3, %s461_s25  ;;  %v454_v11 = vld [vmem:[%s904_s0 + $0xc5] ss:$8 sm:$0xf0]  }
  0x2d   :  { %v450_v12 = vld [vmem:[%s904_s0 + $0x45] ss:$8 sm:$0xf]   ;;  %v343_v14 = vsel %vm92_vm0, %v454_v11, %v453_v10 }
  0x2e   :  { %v451_v13 = vld [vmem:[%s904_s0 + $0x45] ss:$8 sm:$0xf0]   ;;  %322 = vrot.lane.b32.xlu1 %v321_v8, %s461_s25 }
  0x2f   :  { %v332_v15 = vsel %vm92_vm0, %v451_v13, %v450_v12 }
  0x30   :  { %311 = vrot.lane.b32.xlu0 %v310_v9, %s461_s25 }
  0x32   :  { %344 = vrot.lane.b32.xlu1 %v343_v14, %s461_s25 }
  0x34   :  { %333 = vrot.lane.b32.xlu0 %v332_v15, %s461_s25 }
  0x76   :  { %v116_v16 = vpop.permute.xlu1 %115   ;;  %v95_v17 = vpop.permute.xlu0 %94  }
  0x77   :  { %394 = vst.msk [vmem:[%s905_s1 + $0x8] sm:$0xff] %vm96_vm2, %v116_v16   ;;  %97 = vst.msk [vmem:[%s905_s1] sm:$0xff] %vm96_vm2, %v95_v17  }
  0x7a   :  { %v127_v18 = vpop.permute.xlu1 %126   ;;  %v105_v19 = vpop.permute.xlu0 %104  }
  0x7b   :  { %397 = vst.msk [vmem:[%s905_s1 + $0x28] sm:$0xff] %vm96_vm2, %v127_v18   ;;  %391 = vst.msk [vmem:[%s905_s1 + $0x20] sm:$0xff] %vm96_vm2, %v105_v19  }
  0x7e   :  { %v149_v20 = vpop.permute.xlu1 %148   ;;  %v138_v21 = vpop.permute.xlu0 %137  }
  0x7f   :  { %403 = vst.msk [vmem:[%s905_s1 + $0x30] sm:$0xff] %vm96_vm2, %v149_v20   ;;  %400 = vst.msk [vmem:[%s905_s1 + $0x10] sm:$0xff] %vm96_vm2, %v138_v21  }
  0x82   :  { %v171_v22 = vpop.permute.xlu1 %170   ;;  %v160_v23 = vpop.permute.xlu0 %159  }
  0x83   :  { %409 = vst.msk [vmem:[%s905_s1 + $0x38] sm:$0xff] %vm96_vm2, %v171_v22   ;;  %406 = vst.msk [vmem:[%s905_s1 + $0x18] sm:$0xff] %vm96_vm2, %v160_v23  }
  0x86   :  { %v192_v24 = vpop.permute.xlu1 %191   ;;  %v182_v25 = vpop.permute.xlu0 %181  }
  0x87   :  { %414 = vst.msk [vmem:[%s905_s1 + $0x20] sm:$0xff] %vm183_vm3, %v192_v24   ;;  %184 = vst.msk [vmem:[%s905_s1] sm:$0xff] %vm183_vm3, %v182_v25  }
  0x8a   :  { %v214_v26 = vpop.permute.xlu1 %213   ;;  %v203_v27 = vpop.permute.xlu0 %202  }
  0x8b   :  { %420 = vst.msk [vmem:[%s905_s1 + $0x28] sm:$0xff] %vm183_vm3, %v214_v26   ;;  %417 = vst.msk [vmem:[%s905_s1 + $0x8] sm:$0xff] %vm183_vm3, %v203_v27  }
  0x8e   :  { %v236_v28 = vpop.permute.xlu1 %235   ;;  %v225_v29 = vpop.permute.xlu0 %224  }
  0x8f   :  { %426 = vst.msk [vmem:[%s905_s1 + $0x30] sm:$0xff] %vm183_vm3, %v236_v28   ;;  %423 = vst.msk [vmem:[%s905_s1 + $0x10] sm:$0xff] %vm183_vm3, %v225_v29  }
  0x92   :  { %v258_v30 = vpop.permute.xlu1 %257   ;;  %v247_v31 = vpop.permute.xlu0 %246  }
  0x93   :  { %432 = vst.msk [vmem:[%s905_s1 + $0x38] sm:$0xff] %vm183_vm3, %v258_v30   ;;  %429 = vst.msk [vmem:[%s905_s1 + $0x18] sm:$0xff] %vm183_vm3, %v247_v31  }
  0x96   :  { %v279_v32 = vpop.permute.xlu1 %278  }
  0x97   :  { %437 = vst.msk [vmem:[%s905_s1 + $0x20] sm:$0xff] %vm270_vm4, %v279_v32  }
  0x98   :  { %v269_v33 = vpop.permute.xlu0 %268  }
  0x99   :  { %271 = vst.msk [vmem:[%s905_s1] sm:$0xff] %vm270_vm4, %v269_v33  }
  0x9c   :  { %v301_v34 = vpop.permute.xlu1 %300  }
  0x9d   :  { %443 = vst.msk [vmem:[%s905_s1 + $0x28] sm:$0xff] %vm270_vm4, %v301_v34  }
  0x9e   :  { %v290_v35 = vpop.permute.xlu0 %289  }
  0x9f   :  { %440 = vst.msk [vmem:[%s905_s1 + $0x8] sm:$0xff] %vm270_vm4, %v290_v35  }
  0xa0   :  { %v323_v36 = vpop.permute.xlu1 %322  }
  0xa1   :  { %449 = vst.msk [vmem:[%s905_s1 + $0x30] sm:$0xff] %vm270_vm4, %v323_v36  }
  0xa2   :  { %v312_v37 = vpop.permute.xlu0 %311  }
  0xa3   :  { %446 = vst.msk [vmem:[%s905_s1 + $0x10] sm:$0xff] %vm270_vm4, %v312_v37  }
  0xa4   :  { %v345_v38 = vpop.permute.xlu1 %344  }
  0xa5   :  { %455 = vst.msk [vmem:[%s905_s1 + $0x38] sm:$0xff] %vm270_vm4, %v345_v38  }
  0xa6   :  { %v334_v39 = vpop.permute.xlu0 %333  }
  0xa7   :  { %452 = vst.msk [vmem:[%s905_s1 + $0x18] sm:$0xff] %vm270_vm4, %v334_v39  }

// kernel: document_encoder.1
= control target key start
LH: loop header
LB: loop body
LE: loop exit
PB: predicated region body
PF: predicated region fallthrough
CT: control target
= control target key end

     0   :  { %v647_v63 = vmov 0.0   ;;  %vm126_vm0 = vcmask 261120   ;;  %vm307_vm1 = vcmask 64512   ;;  %s941_s2 = inlined_call_operand.vmem [shape: f32[256,32], index: 2, kind: input, shape index: {}]   ;;  %s942_s0 = inlined_call_operand.vmem [shape: bf16[8,256], index: 0, kind: input, shape index: {}]   ;;  %s943_s1 = inlined_call_operand.vmem [shape: f32[32,256], index: 1, kind: input, shape index: {}]   ;;  %s944_s3 = inlined_call_operand.vmem [shape: f32[256,8], index: 3, kind: input, shape index: {}]   ;;  %s945_s4 = inlined_call_operand.vmem [shape: f32[8,256], index: 4, kind: input, shape index: {}]   ;;  %s946_s5 = inlined_call_operand.vmem [shape: f32[8,32], index: 5, kind: output, shape index: {}]  }
   0x1   :  { %v38_v0 = vld [vmem:[%s941_s2 + $0x80] sm:$0xff]  ;;  %v39_v1 = vld [vmem:[%s941_s2 + $0x88] sm:$0xff]  ;;  %v40_v5 = vld [vmem:[%s941_s2 + $0x90] sm:$0xff]  ;;  %194 = vmatprep.mubr.f32.mxu1 %v647_v63 }
   0x2   :  { %v22_v2 = vld [vmem:[%s941_s2] sm:$0xff]  ;;  %v687_v3 = vpack.c.bf16 %v39_v1, %v38_v0  ;;  %v23_v4 = vld [vmem:[%s941_s2 + $0x8] sm:$0xff]  ;;  %v41_v6 = vld [vmem:[%s941_s2 + $0x98] sm:$0xff] }
   0x3   :  { %v698_v7 = vpack.c.bf16 %v23_v4, %v22_v2  ;;  %v700_v8 = vpack.c.bf16 %v41_v6, %v40_v5  ;;  %v24_v9 = vld [vmem:[%s941_s2 + $0x10] sm:$0xff]  ;;  %v25_v10 = vld [vmem:[%s941_s2 + $0x18] sm:$0xff]  ;;  %v42_v11 = vld [vmem:[%s941_s2 + $0xa0] sm:$0xff] }
   0x4   :  { %476 = vmatprep.subr.bf16.mxu0 %v687_v3  ;;  %v43_v12 = vld [vmem:[%s941_s2 + $0xa8] sm:$0xff]  ;;  %v716_v13 = vpack.c.bf16 %v25_v10, %v24_v9  ;;  %v26_v15 = vld [vmem:[%s941_s2 + $0x20] sm:$0xff]  ;;  %v44_v17 = vld [vmem:[%s941_s2 + $0xb0] sm:$0xff] }
   0x5   :  { %477 = vmatpush3.bf16.msra.mxu0 %v698_v7  ;;  %v719_v14 = vpack.c.bf16 %v43_v12, %v42_v11  ;;  %v27_v16 = vld [vmem:[%s941_s2 + $0x28] sm:$0xff]  ;;  %v45_v18 = vld [vmem:[%s941_s2 + $0xb8] sm:$0xff]  ;;  %v28_v21 = vld [vmem:[%s941_s2 + $0x30] sm:$0xff] }
   0x6   :  { %478 = vmatprep.subr.bf16.mxu0 %v700_v8  ;;  %v56_v19 = vpack.c.bf16 %v27_v16, %v26_v15  ;;  %v65_v20 = vpack.c.bf16 %v45_v18, %v44_v17  ;;  %v29_v22 = vld [vmem:[%s941_s2 + $0x38] sm:$0xff]  ;;  %v46_v23 = vld [vmem:[%s941_s2 + $0xc0] sm:$0xff]  ;;  %v47_v24 = vld [vmem:[%s941_s2 + $0xc8] sm:$0xff] }
   0x7   :  { %v750_v25 = vld [vmem:[%s942_s0] sm:$0xff]  ;;  %v119_v27 = vld [vmem:[%s943_s1 + $0x8] sm:$0xff]  ;;  %v121_v28 = vld [vmem:[%s943_s1 + $0x18] sm:$0xff]  ;;  %v57_v30 = vpack.c.bf16 %v29_v22, %v28_v21  ;;  %v66_v33 = vpack.c.bf16 %v47_v24, %v46_v23 }
   0x8   :  { %v473_v26 = vcombine.high %v750_v25, %v750_v25  ;;  %v118_v29 = vld [vmem:[%s943_s1] sm:$0xff]  ;;  %v568_v31 = vpack.c.bf16 %v121_v28, %v119_v27  ;;  %v120_v32 = vld [vmem:[%s943_s1 + $0x10] sm:$0xff]  ;;  %v31_v35 = vld [vmem:[%s941_s2 + $0x48] sm:$0xff]  ;;  %v472_v56 = vcombine.low %v750_v25, %v750_v25 }
   0x9   :  { %479 = vmatpush3.bf16.msra.mxu0 %v716_v13  ;;  %v30_v34 = vld [vmem:[%s941_s2 + $0x40] sm:$0xff]  ;;  %v570_v36 = vpack.c.bf16 %v120_v32, %v118_v29  ;;  %v48_v37 = vld [vmem:[%s941_s2 + $0xd0] sm:$0xff]  ;;  %v49_v38 = vld [vmem:[%s941_s2 + $0xd8] sm:$0xff] }
   0xa   :  { %480 = vmatprep.subr.bf16.mxu0 %v719_v14  ;;  %109 = vmatprep.mubr.bf16.mxu0 %v473_v26  ;;  %v58_v39 = vpack.c.bf16 %v31_v35, %v30_v34  ;;  %v67_v40 = vpack.c.bf16 %v49_v38, %v48_v37  ;;  %v32_v41 = vld [vmem:[%s941_s2 + $0x50] sm:$0xff]  ;;  %v33_v42 = vld [vmem:[%s941_s2 + $0x58] sm:$0xff]  ;;  %v50_v43 = vld [vmem:[%s941_s2 + $0xe0] sm:$0xff] }
   0xb   :  { %569 = vmatprep.subr.bf16.mxu1 %v568_v31  ;;  %v51_v44 = vld [vmem:[%s941_s2 + $0xe8] sm:$0xff]  ;;  %v59_v45 = vpack.c.bf16 %v33_v42, %v32_v41  ;;  %v34_v47 = vld [vmem:[%s941_s2 + $0x60] sm:$0xff]  ;;  %v52_v49 = vld [vmem:[%s941_s2 + $0xf0] sm:$0xff] }
   0xc   :  { %571 = vmatpush1.bf16.msra.mxu1 %v570_v36  ;;  %v68_v46 = vpack.c.bf16 %v51_v44, %v50_v43  ;;  %v35_v48 = vld [vmem:[%s941_s2 + $0x68] sm:$0xff]  ;;  %v53_v50 = vld [vmem:[%s941_s2 + $0xf8] sm:$0xff]  ;;  %v36_v53 = vld [vmem:[%s941_s2 + $0x70] sm:$0xff] }
   0xd   :  { %481 = vmatpush3.bf16.msra.mxu0 %v56_v19  ;;  %v60_v51 = vpack.c.bf16 %v35_v48, %v34_v47  ;;  %v69_v52 = vpack.c.bf16 %v53_v50, %v52_v49  ;;  %v37_v54 = vld [vmem:[%s941_s2 + $0x78] sm:$0xff]  ;;  %v123_v57 = vld [vmem:[%s943_s1 + $0x28] sm:$0xff]  ;;  %v122_v60 = vld [vmem:[%s943_s1 + $0x20] sm:$0xff] }
   0xe   :  { %482 = vmatprep.subr.bf16.mxu0 %v65_v20  ;;  %v61_v55 = vpack.c.bf16 %v37_v54, %v36_v53  ;;  %v125_v58 = vld [vmem:[%s943_s1 + $0x38] sm:$0xff]  ;;  %v124_v61 = vld [vmem:[%s943_s1 + $0x30] sm:$0xff]  ;;  %v221_v0 = vld [vmem:[%s944_s3 + $0x80] sm:$0xff] }
   0xf   :  { %v572_v59 = vpack.c.bf16 %v125_v58, %v123_v57  ;;  %v574_v62 = vpack.c.bf16 %v124_v61, %v122_v60  ;;  %v222_v1 = vld [vmem:[%s944_s3 + $0x88] sm:$0xff]  ;;  %v205_v4 = vld [vmem:[%s944_s3] sm:$0xff]  ;;  %v207_v15 = vld [vmem:[%s944_s3 + $0x10] sm:$0xff] }
  0x10   :  { %v576_v2 = vpack.c.bf16 %v222_v1, %v221_v0  ;;  %v206_v5 = vld [vmem:[%s944_s3 + $0x8] sm:$0xff]  ;;  %v208_v16 = vld [vmem:[%s944_s3 + $0x18] sm:$0xff]  ;;  %v225_v17 = vld [vmem:[%s944_s3 + $0xa0] sm:$0xff] }
  0x11   :  { %483 = vmatpush3.bf16.msra.mxu0 %v57_v30  ;;  %573 = vmatprep.subr.bf16.mxu1 %v572_v59  ;;  %v578_v12 = vpack.c.bf16 %v206_v5, %v205_v4  ;;  %v226_v18 = vld [vmem:[%s944_s3 + $0xa8] sm:$0xff]  ;;  %v209_v21 = vld [vmem:[%s944_s3 + $0x20] sm:$0xff]  ;;  %v227_v23 = vld [vmem:[%s944_s3 + $0xb0] sm:$0xff] }
  0x12   :  { %484 = vmatprep.subr.bf16.mxu0 %v66_v33  ;;  %575 = vmatpush1.bf16.msra.mxu1 %v574_v62  ;;  %v210_v22 = vld [vmem:[%s944_s3 + $0x28] sm:$0xff]  ;;  %v228_v24 = vld [vmem:[%s944_s3 + $0xb8] sm:$0xff]  ;;  %v211_v28 = vld [vmem:[%s944_s3 + $0x30] sm:$0xff] }
  0x13   :  { %577 = vmatprep.subr.bf16.mxu1 %v576_v2  ;;  %v586_v26 = vpack.c.bf16 %v210_v22, %v209_v21  ;;  %v588_v27 = vpack.c.bf16 %v228_v24, %v227_v23  ;;  %v212_v29 = vld [vmem:[%s944_s3 + $0x38] sm:$0xff]  ;;  %v230_v31 = vld [vmem:[%s944_s3 + $0xc8] sm:$0xff]  ;;  %v213_v34 = vld [vmem:[%s944_s3 + $0x40] sm:$0xff] }
  0x14   :  { %v590_v32 = vpack.c.bf16 %v212_v29, %v211_v28  ;;  %v214_v35 = vld [vmem:[%s944_s3 + $0x48] sm:$0xff]  ;;  %v231_v36 = vld [vmem:[%s944_s3 + $0xd0] sm:$0xff]  ;;  %v232_v37 = vld [vmem:[%s944_s3 + $0xd8] sm:$0xff] }
  0x15   :  { %485 = vmatpush3.bf16.msra.mxu0 %v58_v39  ;;  %v594_v38 = vpack.c.bf16 %v214_v35, %v213_v34  ;;  %v216_v41 = vld [vmem:[%s944_s3 + $0x58] sm:$0xff]  ;;  %v233_v42 = vld [vmem:[%s944_s3 + $0xe0] sm:$0xff]  ;;  %v234_v43 = vld [vmem:[%s944_s3 + $0xe8] sm:$0xff] }
  0x16   :  { %486 = vmatprep.subr.bf16.mxu0 %v67_v40  ;;  %v218_v47 = vld [vmem:[%s944_s3 + $0x68] sm:$0xff]  ;;  %v235_v49 = vld [vmem:[%s944_s3 + $0xf0] sm:$0xff]  ;;  %v236_v50 = vld [vmem:[%s944_s3 + $0xf8] sm:$0xff] }
  0x17   :  { %v220_v53 = vld [vmem:[%s944_s3 + $0x78] sm:$0xff] }
  0x19   :  { %487 = vmatpush3.bf16.msra.mxu0 %v59_v45 }
  0x1a   :  { %488 = vmatprep.subr.bf16.mxu0 %v68_v46 }
  0x1d   :  { %489 = vmatpush3.bf16.msra.mxu0 %v60_v51 }
  0x1e   :  { %490 = vmatprep.subr.bf16.mxu0 %v69_v52 }
  0x21   :  { %491 = vmatpush3.bf16.msra.mxu0 %v61_v55 }
  0x22   :  { %609 = vmatprep.subr.bf16.mxu0 %v687_v3 }
  0x24   :  { %110 = vmatmul.mubr.bf16.vlgmr.msra.gmra.mrb[0].mxu0 %v472_v56  ;;  %v201_v56 = vunpack.c.l.bf16 %v750_v25 }
  0x25   :  { %611 = vmatpush3.bf16.msra.mxu0 %v698_v7  ;;  %v223_v7 = vld [vmem:[%s944_s3 + $0x90] sm:$0xff] }
  0x26   :  { %613 = vmatprep.subr.bf16.mxu0 %v700_v8  ;;  %v224_v8 = vld [vmem:[%s944_s3 + $0x98] sm:$0xff] }
  0x29   :  { %615 = vmatpush3.bf16.msra.mxu0 %v716_v13 }
  0x2a   :  { %617 = vmatprep.subr.bf16.mxu0 %v719_v14  ;;  %v580_v14 = vpack.c.bf16 %v224_v8, %v223_v7 }
  0x2d   :  { %619 = vmatpush3.bf16.msra.mxu0 %v56_v19  ;;  %v582_v19 = vpack.c.bf16 %v208_v16, %v207_v15 }
  0x2e   :  { %621 = vmatprep.subr.bf16.mxu0 %v65_v20  ;;  %v584_v20 = vpack.c.bf16 %v226_v18, %v225_v17 }
  0x31   :  { %623 = vmatpush3.bf16.msra.mxu0 %v57_v30  ;;  %v229_v30 = vld [vmem:[%s944_s3 + $0xc0] sm:$0xff] }
  0x32   :  { %625 = vmatprep.subr.bf16.mxu0 %v66_v33  ;;  %v592_v33 = vpack.c.bf16 %v230_v31, %v229_v30 }
  0x35   :  { %627 = vmatpush3.bf16.msra.mxu0 %v58_v39  ;;  %v596_v39 = vpack.c.bf16 %v232_v37, %v231_v36 }
  0x36   :  { %629 = vmatprep.subr.bf16.mxu0 %v67_v40  ;;  %v215_v40 = vld [vmem:[%s944_s3 + $0x50] sm:$0xff] }
  0x37   :  { %v598_v44 = vpack.c.bf16 %v216_v41, %v215_v40 }
  0x39   :  { %631 = vmatpush3.bf16.msra.mxu0 %v59_v45  ;;  %v600_v45 = vpack.c.bf16 %v234_v43, %v233_v42 }
  0x3a   :  { %633 = vmatprep.subr.bf16.mxu0 %v68_v46  ;;  %v217_v46 = vld [vmem:[%s944_s3 + $0x60] sm:$0xff] }
  0x3b   :  { %v602_v48 = vpack.c.bf16 %v218_v47, %v217_v46 }
  0x3d   :  { %635 = vmatpush3.bf16.msra.mxu0 %v60_v51  ;;  %v604_v51 = vpack.c.bf16 %v236_v50, %v235_v49 }
  0x3e   :  { %637 = vmatprep.subr.bf16.mxu0 %v69_v52  ;;  %v219_v52 = vld [vmem:[%s944_s3 + $0x70] sm:$0xff] }
  0x3f   :  { %v606_v54 = vpack.c.bf16 %v220_v53, %v219_v52 }
  0x41   :  { %639 = vmatpush3.bf16.msra.mxu0 %v61_v55  ;;  %v202_v55 = vunpack.c.h.bf16 %v750_v25 }
  0xf7   :  { %v492_v3 = vpop.f32.mrb[0].mxu0 }
  0xf8   :  { %v493_v6 = vpop.f32.mrb[1].mxu0 }
  0xf9   :  { %v494_v9 = vadd.f32 %v493_v6, %v492_v3  ;;  %v495_v10 = vpop.f32.mrb[2].mxu0  ;;  %v320_v6 = vld [vmem:[%s945_s4 + $0x8] sm:$0xff] }
  0xfa   :  { %v496_v11 = vpop.f32.mrb[3].mxu0 }
  0xfb   :  { %v117_v13 = vmul.f32 0.125, %v494_v9 }
  0xfd   :  { %474 = vmatmul.mubr.msk.f32.vlgmr.msra.gmra.mrb[0].mxu1 %vm126_vm0, %v117_v13 }
  0xfe   :  { %579 = vmatpush3.bf16.msra.mxu1 %v578_v12 }
  0xff   :  { %581 = vmatprep.subr.bf16.mxu1 %v580_v14 }
 0x102   :  { %583 = vmatpush3.bf16.msra.mxu1 %v582_v19 }
 0x103   :  { %585 = vmatprep.subr.bf16.mxu1 %v584_v20 }
 0x106   :  { %587 = vmatpush3.bf16.msra.mxu1 %v586_v26 }
 0x107   :  { %589 = vmatprep.subr.bf16.mxu1 %v588_v27 }
 0x10a   :  { %591 = vmatpush3.bf16.msra.mxu1 %v590_v32 }
 0x10b   :  { %593 = vmatprep.subr.bf16.mxu1 %v592_v33 }
 0x10e   :  { %595 = vmatpush3.bf16.msra.mxu1 %v594_v38 }
 0x10f   :  { %597 = vmatprep.subr.bf16.mxu1 %v596_v39 }
 0x112   :  { %599 = vmatpush3.bf16.msra.mxu1 %v598_v44 }
 0x113   :  { %601 = vmatprep.subr.bf16.mxu1 %v600_v45 }
 0x116   :  { %603 = vmatpush3.bf16.msra.mxu1 %v602_v48 }
 0x117   :  { %605 = vmatprep.subr.bf16.mxu1 %v604_v51 }
 0x11a   :  { %607 = vmatpush3.bf16.msra.mxu1 %v606_v54 }
 0x11b   :  { %324 = vmatprep.subr.mxu1 %v320_v6 }
 0x1d0   :  { %v196_v57 = vpop.f32.mrb[0].mxu1 }
 0x1d1   :  { %v198_v58 = vpop.f32.mrb[1].mxu1  ;;  %v203_v60 = vmul.f32 %v201_v56, %v196_v57 }
 0x1d2   :  { %v204_v59 = vmul.f32 %v202_v55, %v198_v58 }
 0x1d4   :  { %301 = vmatprep.mubr.f32.mxu1 %v204_v59 }
 0x1d5   :  { %302 = vmatmul.mubr.f32.vlgmr.msra.gmra.mrb[2].mxu1 %v203_v60 }
 0x1d6   :  { %388 = vmatprep.mubr.f32.mxu1 %v647_v63  ;;  %v319_v63 = vld [vmem:[%s945_s4] sm:$0xff] }
 0x1d7   :  { %325 = vmatpush1.msra.mxu1 %v319_v63 }
 0x2a8   :  { %v530_v61 = vpop.f32.mrb[2].mxu1 }
 0x2a9   :  { %v531_v62 = vpop.f32.mrb[3].mxu1 }
 0x2aa   :  { %v532_v0 = vadd.f32 %v531_v62, %v530_v61 }
 0x2ac   :  { %v308_v1 = vsel %vm307_vm1, %v532_v0, -inf }
 0x2ad   :  { %309 = vmax.xlane.f32.xlu0 %v308_v1 }
 0x33a   :  { %v310_v2 = vpop.xlane.xlu0 %309 }
 0x33b   :  { %v311_v3 = vsub.f32 %v532_v0, %v310_v2 }
 0x33d   :  { %v312_v4 = vmul.f32 1.442695, %v311_v3 }
 0x33f   :  { %643 = vpow2.f32 %v312_v4 }
 0x349   :  { %v644_v25 = vpop.eup %643 }
 0x34a   :  { %v314_v5 = vsel %vm307_vm1, %v644_v25, 0.0 }
 0x34b   :  { %315 = vadd.xlane.f32.xlu0 %v314_v5 }
 0x3d8   :  { %v316_v7 = vpop.xlane.xlu0 %315 }
 0x3d9   :  { %645 = vrcp.f32 %v316_v7 }
 0x3e3   :  { %v646_v8 = vpop.eup %645 }
 0x3e4   :  { %v318_v9 = vmul.f32 %v646_v8, %v644_v25 }
 0x3e6   :  { %475 = vmatmul.mubr.msk.f32.vlgmr.msra.gmra.mrb[4].mxu1 %vm307_vm1, %v318_v9 }
 0x4b9   :  { %v390_v10 = vpop.f32.mrb[4].mxu1 }
 0x4ba   :  { %v392_v11 = vpop.f32.mrb[5].mxu1  ;;  %v395_v13 = vmul.f32 %v390_v10, %v201_v56 }
 0x4bb   :  { %v396_v12 = vmul.f32 %v392_v11, %v202_v55 }
 0x4bd   :  { %461 = vmatprep.mubr.f32.mxu0 %v396_v12 }
 0x4be   :  { %462 = vmatmul.mubr.f32.vlgmr.msra.gmra.mrb[4].mxu0 %v395_v13 }
 0x591   :  { %v565_v14 = vpop.f32.mrb[4].mxu0 }
 0x592   :  { %v566_v15 = vpop.f32.mrb[5].mxu0 }
 0x593   :  { %v567_v16 = vadd.f32 %v566_v15, %v565_v14 }
 0x595   :  { %467 = vst.msk [vmem:[%s946_s5] sm:$0xff] %vm126_vm0, %v567_v16 }

</bundles_post_ra>
